<compile_context>
chip_gen: v5e
topology: v5e:2x2
jax: 0.10.0
libtpu: 0.0.40
codegen_flags: <defaults>
</compile_context>

<pallas_src>
import functools
import math

import numpy as np

import jax
import jax.numpy as jnp
from jax import lax
from jax.experimental import pallas as pl
from jax.experimental.pallas import tpu as pltpu


# ---------------------------------------------------------------------------
# Fused kernel: one batch element per grid step.
#   x_ref    : (T, d_in)           wqkv_ref : (d_in, 3*D)   [Q_all|K_all|V_all]
#   wout_ref : (D, D)              bias_ref : (1, D)
#   o_ref    : (T, D)              ctx_ref  : (T, D) f32 VMEM scratch
# ---------------------------------------------------------------------------
def _fused_mha_kernel(x_ref, wqkv_ref, wout_ref, bias_ref, o_ref, ctx_ref,
                      *, num_heads, d_out):
    T = x_ref.shape[0]
    D = num_heads * d_out

    # One fused QKV projection across all heads (single fat MXU matmul).
    qkv = jnp.dot(x_ref[...], wqkv_ref[...],
                  preferred_element_type=jnp.float32)          # (T, 3*D)

    # Causal additive mask, built once per grid step and reused for all heads.
    row = lax.broadcasted_iota(jnp.int32, (T, T), 0)
    col = lax.broadcasted_iota(jnp.int32, (T, T), 1)
    neg_mask = jnp.where(col > row, jnp.float32(-1e30), jnp.float32(0.0))

    # Static unrolled loop over heads (num_heads is a trace-time constant).
    for h in range(num_heads):
        lo = h * d_out
        q = qkv[:, lo:lo + d_out]                 # scale already folded in W_q
        k = qkv[:, D + lo:D + lo + d_out]
        v = qkv[:, 2 * D + lo:2 * D + lo + d_out]

        # scores[i, j] = sum_d q[i, d] * k[j, d]   (contract last dims, no k.T)
        scores = lax.dot_general(q, k, (((1,), (1,)), ((), ())),
                                 preferred_element_type=jnp.float32)  # (T, T)
        scores = scores + neg_mask

        # Numerically-stable softmax; normalize AFTER the PV matmul.
        m = jnp.max(scores, axis=-1, keepdims=True)
        p = jnp.exp(scores - m)
        denom = jnp.sum(p, axis=-1, keepdims=True)

        ctx = jnp.dot(p, v, preferred_element_type=jnp.float32) / denom
        ctx_ref[:, lo:lo + d_out] = ctx           # column slice of (T, D) scratch

    # Single full-depth output projection + bias, lane-dense store.
    out = jnp.dot(ctx_ref[...], wout_ref[...],
                  preferred_element_type=jnp.float32)
    o_ref[...] = (out + bias_ref[...]).astype(o_ref.dtype)


# ---------------------------------------------------------------------------
# Wrapper
# ---------------------------------------------------------------------------
def multi_head_attention_wrapper(x, wq, wk, wv, w_out, b_out):
    """x: (B, T, d_in); wq/wk/wv: (H, d_in, d_out); w_out: (D, D); b_out: (D,)
    with D = H * d_out.  Returns (B, T, D)."""
    B, T, d_in = x.shape
    H, _, d_out = wq.shape
    D = H * d_out
    scale = 1.0 / math.sqrt(float(d_out))

    # Per-head weights -> one fused (d_in, 3*D) operand laid out
    # [Q_all | K_all | V_all]; head h occupies columns h*d_out:(h+1)*d_out of
    # each D-wide segment.  Fold the 1/sqrt(d_out) scale into W_q.
    def _flat(w):  # (H, d_in, d_out) -> (d_in, H*d_out)
        return jnp.transpose(w, (1, 0, 2)).reshape(d_in, H * d_out)

    wqkv = jnp.concatenate([_flat(wq) * scale, _flat(wk), _flat(wv)], axis=-1)
    bias = b_out.reshape(1, D)

    kernel = functools.partial(_fused_mha_kernel, num_heads=H, d_out=d_out)

    return pl.pallas_call(
        kernel,
        out_shape=jax.ShapeDtypeStruct((B, T, D), x.dtype),
        grid_spec=pltpu.PrefetchScalarGridSpec(
            num_scalar_prefetch=0,
            grid=(B,),
            in_specs=[
                pl.BlockSpec((None, T, d_in), lambda b: (b, 0, 0)),
                # Constant index maps -> weights/bias DMA'd once, VMEM-resident.
                pl.BlockSpec((d_in, 3 * D), lambda b: (0, 0)),
                pl.BlockSpec((D, D), lambda b: (0, 0)),
                pl.BlockSpec((1, D), lambda b: (0, 0)),
            ],
            out_specs=pl.BlockSpec((None, T, D), lambda b: (b, 0, 0)),
            scratch_shapes=[pltpu.VMEM((T, D), jnp.float32)],
        ),
        compiler_params=pltpu.CompilerParams(
            dimension_semantics=("parallel",)),
    )(x, wqkv, w_out, bias)


# ---------------------------------------------------------------------------
# Gold reference: float64 NumPy, mirrors the PyTorch forward exactly.
# ---------------------------------------------------------------------------
def _reference(x, wq, wk, wv, w_out, b_out):
    x = np.asarray(x, np.float64)
    wq = np.asarray(wq, np.float64)
    wk = np.asarray(wk, np.float64)
    wv = np.asarray(wv, np.float64)
    w_out = np.asarray(w_out, np.float64)
    b_out = np.asarray(b_out, np.float64)

    B, T, d_in = x.shape
    H, _, d_out = wq.shape
    mask = np.triu(np.ones((T, T), dtype=bool), k=1)
    heads = []
    for h in range(H):
        q = x @ wq[h]
        k = x @ wk[h]
        v = x @ wv[h]
        s = np.einsum("btd,bsd->bts", q, k) / np.sqrt(float(d_out))
        s = np.where(mask[None, :, :], -np.inf, s)
        s = s - s.max(axis=-1, keepdims=True)
        p = np.exp(s)
        a = p / p.sum(axis=-1, keepdims=True)
        heads.append(a @ v)
    ctx = np.concatenate(heads, axis=-1)
    return ctx @ w_out + b_out


if __name__ == "__main__":
    # Small shapes consistent with the module; D = H*d_out = 128 (lane-dense).
    B, T, d_in, d_out, H = 2, 16, 32, 64, 2
    D = H * d_out

    key = jax.random.PRNGKey(0)
    kx, kq, kk, kv, kw, kb = jax.random.split(key, 6)

    x = jax.random.normal(kx, (B, T, d_in), dtype=jnp.float32)
    wq = jax.random.normal(kq, (H, d_in, d_out), jnp.float32) / math.sqrt(d_in)
    wk = jax.random.normal(kk, (H, d_in, d_out), jnp.float32) / math.sqrt(d_in)
    wv = jax.random.normal(kv, (H, d_in, d_out), jnp.float32) / math.sqrt(d_in)
    w_out = jax.random.normal(kw, (D, D), jnp.float32) / math.sqrt(D)
    b_out = jax.random.normal(kb, (D,), jnp.float32) * 0.01

    out = jax.block_until_ready(
        multi_head_attention_wrapper(x, wq, wk, wv, w_out, b_out))

    ref = _reference(x, wq, wk, wv, w_out, b_out)
    assert out.shape == (B, T, D), out.shape

    out64 = np.asarray(out, np.float64)
    max_err = float(np.max(np.abs(out64 - ref)))
    # Tolerance absorbs TPU MXU f32 rounding; structural bugs would be >> this.
    assert np.allclose(out64, ref, atol=2e-2, rtol=2e-2), (
        f"mismatch vs reference (max abs err {max_err:.3e})")

    print("KERNEL_OK")
</pallas_src>

<mosaic_0001>
module attributes {stable_mosaic.version = 11 : i64} {
  func.func @_fused_mha_kernel(%arg0: i32, %arg1: memref<1x16x32xf32, #tpu.memory_space<vmem>>, %arg2: memref<32x384xf32, #tpu.memory_space<vmem>>, %arg3: memref<128x128xf32, #tpu.memory_space<vmem>>, %arg4: memref<1x128xf32, #tpu.memory_space<vmem>>, %arg5: memref<1x16x128xf32, #tpu.memory_space<vmem>>, %arg6: memref<16x128xf32, #tpu.memory_space<vmem>>) attributes {dimension_semantics = [#tpu.dimension_semantics<parallel>], iteration_bounds = array<i64: 2>, scalar_prefetch = 0 : i64, scratch_operands = 1 : i64, tpu.core_type = #tpu.core_type<tc>, window_params = [{transform_indices = @transform_0, window_bounds = array<i64: 1, 16, 32>}, {pipeline_mode = #tpu.pipeline_mode<synchronous>, transform_indices = @transform_1, window_bounds = array<i64: 32, 384>}, {pipeline_mode = #tpu.pipeline_mode<synchronous>, transform_indices = @transform_2, window_bounds = array<i64: 128, 128>}, {pipeline_mode = #tpu.pipeline_mode<synchronous>, transform_indices = @transform_3, window_bounds = array<i64: 1, 128>}, {transform_indices = @transform_4, window_bounds = array<i64: 1, 16, 128>}]} {
    %c0 = arith.constant 0 : index
    %c0_0 = arith.constant 0 : index
    %c0_1 = arith.constant 0 : index
    %0 = vector.load %arg1[%c0, %c0_0, %c0_1] : memref<1x16x32xf32, #tpu.memory_space<vmem>>, vector<1x16x32xf32>
    %1 = vector.shape_cast %0 : vector<1x16x32xf32> to vector<16x32xf32>
    %c0_2 = arith.constant 0 : index
    %c0_3 = arith.constant 0 : index
    %2 = vector.load %arg2[%c0_2, %c0_3] : memref<32x384xf32, #tpu.memory_space<vmem>>, vector<32x384xf32>
    %cst = arith.constant dense<0.000000e+00> : vector<16x384xf32>
    %3 = tpu.matmul %1, %2, %cst {dimension_numbers = #tpu.dot_dimension_numbers<[1], [0], [0], [1], [0, 0, 1, 1], [], []>} : vector<16x32xf32>, vector<32x384xf32>, vector<16x384xf32> -> vector<16x384xf32>
    %4 = tpu.iota {dimensions = array<i32: 0>} : vector<16x16xi32>
    %5 = tpu.iota {dimensions = array<i32: 1>} : vector<16x16xi32>
    %6 = arith.cmpi sgt, %5, %4 : vector<16x16xi32>
    %cst_4 = arith.constant -1.000000e+30 : f32
    %cst_5 = arith.constant 0.000000e+00 : f32
    %7 = vector.broadcast %cst_4 : f32 to vector<16x16xf32>
    %8 = vector.broadcast %cst_5 : f32 to vector<16x16xf32>
    %9 = arith.select %6, %7, %8 : vector<16x16xi1>, vector<16x16xf32>
    %10 = vector.extract_strided_slice %3 {offsets = [0, 0], sizes = [16, 64], strides = [1, 1]} : vector<16x384xf32> to vector<16x64xf32>
    %11 = vector.extract_strided_slice %3 {offsets = [0, 128], sizes = [16, 64], strides = [1, 1]} : vector<16x384xf32> to vector<16x64xf32>
    %12 = vector.extract_strided_slice %3 {offsets = [0, 256], sizes = [16, 64], strides = [1, 1]} : vector<16x384xf32> to vector<16x64xf32>
    %cst_6 = arith.constant dense<0.000000e+00> : vector<16x16xf32>
    %13 = tpu.matmul %10, %11, %cst_6 {dimension_numbers = #tpu.dot_dimension_numbers<[1], [1], [0], [0], [0, 0, 1, 0], [], []>} : vector<16x64xf32>, vector<16x64xf32>, vector<16x16xf32> -> vector<16x16xf32>
    %14 = arith.addf %13, %9 : vector<16x16xf32>
    %cst_7 = arith.constant dense<0xFF800000> : vector<16xf32>
    %15 = vector.multi_reduction <maximumf>, %14, %cst_7 [1] : vector<16x16xf32> to vector<16xf32>
    %16 = vector.shape_cast %15 : vector<16xf32> to vector<16x1xf32>
    %17 = vector.broadcast %16 : vector<16x1xf32> to vector<16x16xf32>
    %18 = arith.subf %14, %17 : vector<16x16xf32>
    %19 = math.exp %18 : vector<16x16xf32>
    %cst_8 = arith.constant dense<0.000000e+00> : vector<16xf32>
    %20 = vector.multi_reduction <add>, %19, %cst_8 [1] : vector<16x16xf32> to vector<16xf32>
    %21 = vector.shape_cast %20 : vector<16xf32> to vector<16x1xf32>
    %cst_9 = arith.constant dense<0.000000e+00> : vector<16x64xf32>
    %22 = tpu.matmul %19, %12, %cst_9 {dimension_numbers = #tpu.dot_dimension_numbers<[1], [0], [0], [1], [0, 0, 1, 1], [], []>} : vector<16x16xf32>, vector<16x64xf32>, vector<16x64xf32> -> vector<16x64xf32>
    %23 = vector.broadcast %21 : vector<16x1xf32> to vector<16x64xf32>
    %24 = arith.divf %22, %23 : vector<16x64xf32>
    %c0_10 = arith.constant 0 : index
    %c0_11 = arith.constant 0 : index
    %25 = vector.load %arg6[%c0_10, %c0_11] : memref<16x128xf32, #tpu.memory_space<vmem>>, vector<16x64xf32>
    tpu.vector_store %arg6[%c0_10, %c0_11], %24 {strides = array<i32>} : memref<16x128xf32, #tpu.memory_space<vmem>>, vector<16x64xf32>,
    %26 = vector.extract_strided_slice %3 {offsets = [0, 64], sizes = [16, 64], strides = [1, 1]} : vector<16x384xf32> to vector<16x64xf32>
    %27 = vector.extract_strided_slice %3 {offsets = [0, 192], sizes = [16, 64], strides = [1, 1]} : vector<16x384xf32> to vector<16x64xf32>
    %28 = vector.extract_strided_slice %3 {offsets = [0, 320], sizes = [16, 64], strides = [1, 1]} : vector<16x384xf32> to vector<16x64xf32>
    %cst_12 = arith.constant dense<0.000000e+00> : vector<16x16xf32>
    %29 = tpu.matmul %26, %27, %cst_12 {dimension_numbers = #tpu.dot_dimension_numbers<[1], [1], [0], [0], [0, 0, 1, 0], [], []>} : vector<16x64xf32>, vector<16x64xf32>, vector<16x16xf32> -> vector<16x16xf32>
    %30 = arith.addf %29, %9 : vector<16x16xf32>
    %cst_13 = arith.constant dense<0xFF800000> : vector<16xf32>
    %31 = vector.multi_reduction <maximumf>, %30, %cst_13 [1] : vector<16x16xf32> to vector<16xf32>
    %32 = vector.shape_cast %31 : vector<16xf32> to vector<16x1xf32>
    %33 = vector.broadcast %32 : vector<16x1xf32> to vector<16x16xf32>
    %34 = arith.subf %30, %33 : vector<16x16xf32>
    %35 = math.exp %34 : vector<16x16xf32>
    %cst_14 = arith.constant dense<0.000000e+00> : vector<16xf32>
    %36 = vector.multi_reduction <add>, %35, %cst_14 [1] : vector<16x16xf32> to vector<16xf32>
    %37 = vector.shape_cast %36 : vector<16xf32> to vector<16x1xf32>
    %cst_15 = arith.constant dense<0.000000e+00> : vector<16x64xf32>
    %38 = tpu.matmul %35, %28, %cst_15 {dimension_numbers = #tpu.dot_dimension_numbers<[1], [0], [0], [1], [0, 0, 1, 1], [], []>} : vector<16x16xf32>, vector<16x64xf32>, vector<16x64xf32> -> vector<16x64xf32>
    %39 = vector.broadcast %37 : vector<16x1xf32> to vector<16x64xf32>
    %40 = arith.divf %38, %39 : vector<16x64xf32>
    %c0_16 = arith.constant 0 : index
    %c64 = arith.constant 64 : index
    %41 = vector.load %arg6[%c0_16, %c64] : memref<16x128xf32, #tpu.memory_space<vmem>>, vector<16x64xf32>
    tpu.vector_store %arg6[%c0_16, %c64], %40 {strides = array<i32>} : memref<16x128xf32, #tpu.memory_space<vmem>>, vector<16x64xf32>,
    %c0_17 = arith.constant 0 : index
    %c0_18 = arith.constant 0 : index
    %42 = vector.load %arg6[%c0_17, %c0_18] : memref<16x128xf32, #tpu.memory_space<vmem>>, vector<16x128xf32>
    %c0_19 = arith.constant 0 : index
    %c0_20 = arith.constant 0 : index
    %43 = vector.load %arg3[%c0_19, %c0_20] : memref<128x128xf32, #tpu.memory_space<vmem>>, vector<128x128xf32>
    %cst_21 = arith.constant dense<0.000000e+00> : vector<16x128xf32>
    %44 = tpu.matmul %42, %43, %cst_21 {dimension_numbers = #tpu.dot_dimension_numbers<[1], [0], [0], [1], [0, 0, 1, 1], [], []>} : vector<16x128xf32>, vector<128x128xf32>, vector<16x128xf32> -> vector<16x128xf32>
    %c0_22 = arith.constant 0 : index
    %c0_23 = arith.constant 0 : index
    %45 = vector.load %arg4[%c0_22, %c0_23] : memref<1x128xf32, #tpu.memory_space<vmem>>, vector<1x128xf32>
    %46 = vector.broadcast %45 : vector<1x128xf32> to vector<16x128xf32>
    %47 = arith.addf %44, %46 : vector<16x128xf32>
    %c0_24 = arith.constant 0 : index
    %c0_25 = arith.constant 0 : index
    %c0_26 = arith.constant 0 : index
    %48 = vector.load %arg5[%c0_24, %c0_25, %c0_26] : memref<1x16x128xf32, #tpu.memory_space<vmem>>, vector<1x16x128xf32>
    %49 = vector.shape_cast %48 : vector<1x16x128xf32> to vector<16x128xf32>
    %50 = vector.shape_cast %47 : vector<16x128xf32> to vector<1x16x128xf32>
    tpu.vector_store %arg5[%c0_24, %c0_25, %c0_26], %50 {strides = array<i32>} : memref<1x16x128xf32, #tpu.memory_space<vmem>>, vector<1x16x128xf32>,
    return
  }
  func.func @transform_0(%arg0: i32) -> (i32, i32, i32) {
    %c0_i32 = arith.constant 0 : i32
    %c0_i32_0 = arith.constant 0 : i32
    %c0_i32_1 = arith.constant 0 : i32
    return %arg0, %c0_i32, %c0_i32_0 : i32, i32, i32
  }
  func.func @transform_1(%arg0: i32) -> (i32, i32) {
    %c0_i32 = arith.constant 0 : i32
    %c0_i32_0 = arith.constant 0 : i32
    %c0_i32_1 = arith.constant 0 : i32
    return %c0_i32, %c0_i32_0 : i32, i32
  }
  func.func @transform_2(%arg0: i32) -> (i32, i32) {
    %c0_i32 = arith.constant 0 : i32
    %c0_i32_0 = arith.constant 0 : i32
    %c0_i32_1 = arith.constant 0 : i32
    return %c0_i32, %c0_i32_0 : i32, i32
  }
  func.func @transform_3(%arg0: i32) -> (i32, i32) {
    %c0_i32 = arith.constant 0 : i32
    %c0_i32_0 = arith.constant 0 : i32
    %c0_i32_1 = arith.constant 0 : i32
    return %c0_i32, %c0_i32_0 : i32, i32
  }
  func.func @transform_4(%arg0: i32) -> (i32, i32, i32) {
    %c0_i32 = arith.constant 0 : i32
    %c0_i32_0 = arith.constant 0 : i32
    %c0_i32_1 = arith.constant 0 : i32
    return %arg0, %c0_i32, %c0_i32_0 : i32, i32, i32
  }
}

</mosaic_0001>

<bundles_post_ra>
// kernel: tpu_custom_call.1
= control target key start
LH: loop header
LB: loop body
LE: loop exit
PB: predicated region body
PF: predicated region fallthrough
CT: control target
= control target key end

     0   :  { %9 = vsyncpa [#allocation4], 0  ;;  %s1277_s0 = inlined_call_operand.hbm [shape: f32[2,16,32], index: 0, kind: input, shape index: {}]   ;;  %s1278_s1 = inlined_call_operand.hbm [shape: f32[32,384], index: 1, kind: input, shape index: {}]   ;;  %s1279_s2 = inlined_call_operand.hbm [shape: f32[128,128], index: 2, kind: input, shape index: {}]   ;;  %s1280_s3 = inlined_call_operand.vmem [shape: f32[1,128], index: 3, kind: input, shape index: {}]   ;;  %s1281_s4 = inlined_call_operand.hbm [shape: f32[2,16,128], index: 4, kind: output, shape index: {}]  }
   0x1   :  { %11 = vsyncpa [#allocation4 + $0x1], 0 }
   0x2   :  { %12 = vsyncpa [#allocation7], 0 }
   0x3   :  { %13 = vsyncpa [#allocation5], 0 }
   0x4   :  { %15 = vsyncpa [#allocation5 + $0x1], 0  ;;  %s1088_s15 = smov 0   ;;  %s1090_s16 = smov 0  }
   0x5   :  { %s1092_s17 = smov 0   ;;  %s1094_s18 = smov 0  }
   0x6 LB: > { %s1109_s19 = sadd.s32 4294967295, %s1051_s18   ;;  %s756_s20 = sadd.s32 4294967294, %s1051_s18   ;;  %s1051_s18 = sphi %s1094_s18, %s1291_s18   ;;  %s1047_s17 = sphi %s1092_s17, %s1290_s17   ;;  %s1043_s16 = sphi %s1090_s16, %s1289_s16   ;;  %s1039_s15 = sphi %s1088_s15, %s1288_s15  }
   0x7   : > { %p41_p0 = scmp.ne.s32.totalorder %s1043_s16, %s1039_s15  ;;  %p42_p1 = scmp.eq.s32.totalorder %s1109_s19, 0 }
   0x8   : > { %p128_p2 = scmp.eq.s32.totalorder %s1109_s19, 1  ;;  %p134_p3 = scmp.eq.s32.totalorder %s756_s20, 1 }
   0x9   : > { %p1118_p4 = por %p42_p1, %p41_p0  ;;  %p757_p5 = scmp.ge.s32.totalorder %s1051_s18, 1 }
   0xa   : > { %p1123_p6 = por %p134_p3, %p41_p0  ;;  %p141_p7 = scmp.lt.s32.totalorder %s1051_s18, 3 }
   0xb   : > { %s152_s25 = sshll.u32 %s1278_s1, 4  ;;  %s1053_s27 = smov [#allocation6]   ;;  %s153_s25 = int_to_ptr.hbm [resolvable:$true] %s152_s25 }
   0xc   : > { %p1131_p8 = pnand %p757_p5, %p141_p7  ;;  %s154_s28 = sshll.u32 %s1053_s27, 4  ;;  %s155_s28 = int_to_ptr.vmem [resolvable:$true] %s154_s28 }
   0xd   : > { %s166_s5 = sshll.u32 %s1279_s2, 4  ;;  %s1054_s6 = smov 384   ;;  %s167_s5 = int_to_ptr.hbm [resolvable:$true] %s166_s5 }
   0xe   : > { %p806_p9 = pneg %p1131_p8  ;;  %s1055_s7 = smov 24  }
   0xf   : > { %s1056_s8 = smov [#allocation8]   ;;  %s1057_s10 = smov 128  }
  0x10   : > { %p807_p10 = pnand %p806_p9, %p42_p1  ;;  %s168_s9 = sshll.u32 %s1056_s8, 4  ;;  %s169_s9 = int_to_ptr.vmem [resolvable:$true] %s168_s9 }
  0x11   : > { %s1058_s11 = smov 8   ;;  %s1147_s12 = sadd.s32 1, %s1051_s18  }
  0x12   : > { %809 = dma.hbm_to_vmem [thread:$0]  (!%p807_p10), %s153_s25, 1536, %s155_s28, [#allocation7], %s1054_s6, %s1054_s6, %s1055_s7  }
  0x13   : > { %812 = dma.hbm_to_vmem [thread:$0]  (!%p807_p10), %s167_s5, 2048, %s169_s9, [#allocation7], %s1057_s10, %s1057_s10, %s1058_s11  }
  0x14   : > { %s25_s13 = ssub.s32 %s1051_s18, %s1147_s12  ;;  %s28_s14 = sadd.s32 1, %s1047_s17 }
  0x15   : > { %p26_p12 = scmp.eq.s32.totalorder %s25_s13, 0  ;;  %p35_p13 = scmp.ne.s32.totalorder %s1047_s17, %s1043_s16 }
  0x16   : > { %p36_p0 = scmp.eq.s32.totalorder %s1051_s18, 0  ;;  %p823_p7 = scmp.lt.s32.totalorder %s1051_s18, 2 }
  0x17   : > { %s1156_s20 = scalar_select %p26_p12, %s1047_s17, %s28_s14  }
  0x18   : > { %p37_p3 = por %p36_p0, %p35_p13  ;;  %p1160_p5 = por %p128_p2, %p35_p13 }
  0x19   : > { %s185_s24 = sand.u32 1, %s1047_s17   ;;  %s792_s27 = sshll.u32 %s1051_s18, 4 }
  0x1a   : > { %s761_s25 = sshll.u32 %s185_s24, 4  ;;  %s194_s30 = scalar_lea.hbm %s1277_s0, %s792_s27 }
  0x1b   : > { %s189_s5 = scalar_lea.vmem [#allocation3], %s761_s25  ;;  %s195_s7 = sshll.u32 %s194_s30, 4  ;;  %s196_s7 = int_to_ptr.hbm [resolvable:$true] %s195_s7 }
  0x1c   : > { %s197_s6 = sshll.u32 %s189_s5, 4  ;;  %p1170_p9 = pnand %p823_p7, %p37_p3  ;;  %s198_s6 = int_to_ptr.vmem [resolvable:$true] %s197_s6 }
  0x1d   : > { %s186_s9 = scalar_lea.sflag [#allocation4], %s185_s24  ;;  %s951_s13 = sshra.s32 %s196_s7, 4  ;;  %s952_s13 = int_to_ptr.hbm [resolvable:$true] %s951_s13 }
  0x1e   : > { %s953_s14 = scalar_lea.hbm %s952_s13, 16  ;;  %p955_p10 = pneg %p1170_p9 }
  0x1f   : > { %p954_p2 = scmp.ne.s32.totalorder %s952_s13, %s953_s14  ;;  %s958_s28 = scalar_lea.hbm %s1277_s0, 32 }
  0x20   : > { %p959_p0 = scmp.lt.s32.totalorder %s952_s13, %s1277_s0  ;;  %p960_p3 = scmp.lt.s32.totalorder %s958_s28, %s953_s14 }
  0x21   : > { %p956_p12 = pnand %p955_p10, %p954_p2 }
  0x22   : > { %p961_p7 = por %p960_p3, %p959_p0 }
  0x23   : > { %p957_p13 = pneg %p956_p12 }
  0x25   : > { %p962_p11 = pnand %p961_p7, %p957_p13 }
  0x27   : > { %965 = shalt.err (!%p962_p11)
}
  0x28   : > { %816 = dma.hbm_to_vmem [thread:$0]  (!%p1170_p9), %s196_s7, 256, %s198_s6, %s186_s9, %s1057_s10, %s1057_s10, %s1058_s11  }
  0x29   : > { %209 = sbr.rel (%p1131_p8) target bundleno = 978 (0x3d2), region = 36  ;;  %s1190_s24 = sand.u32 (!%p1131_p8), 1, %s1043_s16  }
  0x2a   : > { %s765_s5 = sshll.u32 (!%p1131_p8), %s1190_s24, 4  ;;  %s212_s13 = scalar_lea.sflag (!%p1131_p8), [#allocation4], %s1190_s24 }
  0x2b   : > { %s215_s14 = scalar_lea.vmem (!%p1131_p8), [#allocation3], %s765_s5 }
  0x2e   : > { %1026 = dma.done.wait (%p1118_p4), %s212_s13, 256  }
  0x2f   : > { %1028 = vsyncadd (%p1118_p4), %s212_s13, 4294967040 }
  0x30   : > { %1030 = dma.done.wait (%p42_p1), [#allocation7], 3584  }
  0x31   : > { %1032 = vsyncadd (%p42_p1), [#allocation7], 4294963712  ;;  %v263_v0 = vld [vmem:[#allocation6 + $0x50] sm:$0xff]  ;;  %v260_v1 = vld [vmem:[#allocation6 + $0x38] sm:$0xff]  ;;  %vm265_vm0 = vcmask 261120   ;;  %s1059_s21 = smov 64   ;;  %v341_v18 = vlaneseq }
  0x32   : > { %307 = vmatpush.msra.mxu1 %v263_v0  ;;  %v262_v2 = vld [vmem:[#allocation6 + $0x48] sm:$0xff]  ;;  %v257_v3 = vld [vmem:[#allocation6 + $0x20] sm:$0xff]  ;;  %v259_v4 = vld [vmem:[#allocation6 + $0x30] sm:$0xff]  ;;  %vm350_vm1 = vcmask 523264   ;;  %v1060_v22 = vmov 0.0   ;;  %vm386_vm4 = vcmask 130048  }
  0x33   : > { %284 = vmatpush.msra.mxu0 %v262_v2  ;;  %v256_v5 = vld [vmem:[#allocation6 + $0x18] sm:$0xff]  ;;  %v254_v6 = vld [vmem:[#allocation6 + $0x8] sm:$0xff]  ;;  %v251_v7 = vld [vmem:[%s215_s14] sm:$0xff]  ;;  %v342_v19 = vshrl.u32 %v341_v18, 7  ;;  %v345_v20 = vand.u32 127, %v341_v18  ;;  %s250_s11 = scalar_lea.vmem [#allocation9], %s765_s5 }
  0x34   : > { %308 = vmatpush.msra.mxu1 %v260_v1  ;;  %v253_v8 = vld [vmem:[#allocation6] sm:$0xff]  ;;  %v252_v9 = vld [vmem:[%s215_s14 + $0x8] sm:$0xff]  ;;  %v255_v13 = vld [vmem:[#allocation6 + $0x10] sm:$0xff]  ;;  %s793_s6 = sshll.u32 %s1109_s19, 4  ;;  %s661_s27 = sshll.u32 %s250_s11, 4  ;;  %s662_s27 = int_to_ptr.vmem [resolvable:$true] %s661_s27 }
  0x35   : > { %285 = vmatpush.msra.mxu0 %v259_v4  ;;  %v264_v10 = vld [vmem:[#allocation6 + $0x58] sm:$0xff]  ;;  %v261_v11 = vld [vmem:[#allocation6 + $0x40] sm:$0xff]  ;;  %v258_v12 = vld [vmem:[#allocation6 + $0x28] sm:$0xff]  ;;  %v343_v21 = vadd.s32 8, %v342_v19  ;;  %vm346_vm3 = vcmp.gt.s32.totalorder %v345_v20, %v342_v19  ;;  %s660_s9 = scalar_lea.hbm %s1281_s4, %s793_s6  ;;  %s649_s28 = scalar_lea.sflag [#allocation5], %s1190_s24 }
  0x36   : > { %309 = vmatpush.msra.mxu1 %v257_v3  ;;  %330 = vmatpush.msra.mxu2 %v264_v10  ;;  %v348_v31 = vsel %vm346_vm3, -1e+30, %v1060_v22  ;;  %s663_s25 = sshll.u32 %s660_s9, 4  ;;  %s1001_s13 = scalar_lea.hbm %s1281_s4, 32  ;;  %s664_s25 = int_to_ptr.hbm [resolvable:$true] %s663_s25 }
  0x37   : > { %286 = vmatpush.msra.mxu0 %v256_v5  ;;  %vm347_vm2 = vcmp.gt.s32.totalorder %v345_v20, %v343_v21  ;;  %v615_v21 = vld [vmem:[#allocation8 + $0x60] sm:$0xff]  ;;  %s995_s29 = sshra.s32 %s664_s25, 4  ;;  %s996_s29 = int_to_ptr.hbm [resolvable:$true] %s995_s29 }
  0x38   : > { %310 = vmatpush.msra.mxu1 %v254_v6  ;;  %331 = vmatpush.msra.mxu2 %v261_v11  ;;  %v349_v23 = vsel %vm347_vm2, -1e+30, %v1060_v22  ;;  %v618_v11 = vld [vmem:[#allocation8 + $0x78] sm:$0xff]  ;;  %s997_s30 = scalar_lea.hbm %s996_s29, 16  ;;  %p1002_p11 = scmp.lt.s32.totalorder %s996_s29, %s1281_s4 }
  0x39   : > { %771 = vmatmul.msk.f32.vlgmr.msra.gmra.mxu1 %vm265_vm0, %v251_v7  ;;  %287 = vmatpush.msra.mxu0 %v253_v8  ;;  %p998_p1 = scmp.ne.s32.totalorder %s996_s29, %s997_s30  ;;  %p1003_p9 = scmp.lt.s32.totalorder %s1001_s13, %s997_s30 }
  0x3a   : > { %769 = vmatmul.msk.f32.vlgmr.msra.gmra.mxu0 %vm265_vm0, %v251_v7  ;;  %332 = vmatpush.msra.mxu2 %v258_v12  ;;  %v617_v12 = vld [vmem:[#allocation8 + $0x70] sm:$0xff] }
  0x3b   : > { %p999_p4 = pnand %p998_p1, %p1160_p5  ;;  %p1004_p2 = por %p1003_p9, %p1002_p11 }
  0x3c   : > { %333 = vmatpush.msra.mxu2 %v255_v13 }
  0x3d   : > { %773 = vmatmul.msk.f32.vlgmr.msra.gmra.mxu2 %vm265_vm0, %v251_v7  ;;  %p1000_p8 = pneg %p999_p4 }
  0x3f   : > { %p1005_p10 = pnand %p1004_p2, %p1000_p8 }
  0x41   : > { %772 = vmatmul.msk.f32.gmra.mxu1 %vm265_vm0, %v252_v9 }
  0x42   : > { %770 = vmatmul.msk.f32.gmra.mxu0 %vm265_vm0, %v252_v9 }
  0x45   : > { %774 = vmatmul.msk.f32.gmra.mxu2 %vm265_vm0, %v252_v9 }
  0xb6   : > { %v312_v14 = vpop.f32.mrf.mxu1 }
  0xb7   : > { %v289_v15 = vpop.f32.mrf.mxu0 }
  0xb8   : > { %466 = vrot.lane.b32.xlu1 %v289_v15, %s1059_s21 }
  0xbe   : > { %v315_v16 = vpop.f32.mrf.mxu1 }
  0xbf   : > { %472 = vrot.lane.b32.xlu0 %v315_v16, %s1059_s21  ;;  %775 = vmatpush.xpose.msk.msra.mxu3 %vm350_vm1, %v315_v16  ;;  %v292_v17 = vpop.f32.mrf.mxu0 }
  0xc0   : > { %468 = vrot.lane.b32.xlu1 %v292_v17, %s1059_s21  ;;  %v335_v27 = vpop.f32.mrf.mxu2 }
  0xc3   : > { %776 = vmatpush.xpose.msk.msra.mxu3 %vm350_vm1, %v312_v14 }
  0xc6   : > { %777 = vmatmul.msk.f32.vlgmr.msra.gmra.mxu3 %vm350_vm1, %v289_v15 }
  0xc7   : > { %470 = vrot.lane.b32.xlu0 %v312_v14, %s1059_s21  ;;  %623 = vmatpush.msrb.mxu3 %v618_v11  ;;  %v616_v14 = vld [vmem:[#allocation8 + $0x68] sm:$0xff]  ;;  %v874_v11 = vld [vmem:[%s1280_s3] ss:$0 sm:$0xff] }
  0xc8   : > { %v338_v28 = vpop.f32.mrf.mxu2 }
  0xc9   : > { %v869_v30 = vpack.i.bf16 %v335_v27, %v338_v28  ;;  %425 = vmatpush.msrb.mxu0 %v338_v28  ;;  %624 = vmatpush.msrb.mxu3 %v617_v12 }
  0xcb   : > { %426 = vmatpush.msrb.mxu0 %v335_v27  ;;  %625 = vmatpush.msrb.mxu3 %v616_v14 }
  0xcd   : > { %626 = vmatpush.msrb.mxu3 %v615_v21 }
  0xce   : > { %778 = vmatmul.msk.f32.gmra.mxu3 %vm350_vm1, %v292_v17 }
  0xcf   : > { %870 = vrot.lane.b32.xlu0 %v869_v30, %s1059_s21 }
 0x12a   : > { %v467_v25 = vpop.permute.xlu1 %466 }
 0x131   : > { %v473_v24 = vpop.permute.xlu0 %472 }
 0x132   : > { %781 = vmatpush.xpose.msk.msrb.mxu1 %vm350_vm1, %v473_v24  ;;  %v469_v29 = vpop.permute.xlu1 %468 }
 0x139   : > { %v471_v26 = vpop.permute.xlu0 %470 }
 0x13a   : > { %782 = vmatpush.xpose.msk.msrb.mxu1 %vm350_vm1, %v471_v26 }
 0x13d   : > { %783 = vmatmul.msk.f32.vlgmr.msrb.gmra.mxu1 %vm350_vm1, %v467_v25  ;;  %v614_v25 = vld [vmem:[#allocation8 + $0x58] sm:$0xff] }
 0x13e   : > { %627 = vmatpush.msrb.mxu3 %v614_v25 }
 0x141   : > { %v871_v35 = vpop.permute.xlu0 %870 }
 0x142   : > { %v872_v36 = vunpack.i.l.bf16 %v871_v35  ;;  %v873_v37 = vunpack.i.h.bf16 %v871_v35 }
 0x144   : > { %551 = vmatpush.msrb.mxu2 %v872_v36 }
 0x145   : > { %784 = vmatmul.msk.f32.gmra.mxu1 %vm350_vm1, %v469_v29  ;;  %v613_v29 = vld [vmem:[#allocation8 + $0x50] sm:$0xff] }
 0x146   : > { %552 = vmatpush.msrb.mxu2 %v873_v37  ;;  %628 = vmatpush.msrb.mxu3 %v613_v29  ;;  %v611_v37 = vld [vmem:[#allocation8 + $0x40] sm:$0xff] }
 0x149   : > { %v380_v32 = vpop.f32.mrf.mxu3 }
 0x14a   : > { %v381_v33 = vadd.f32 %v380_v32, %v348_v31 }
 0x14c   : > { %v387_v34 = vsel %vm386_vm4, %v381_v33, -inf }
 0x14d   : > { %388 = vmax.xlane.f32.xlu1 %v387_v34 }
 0x151   : > { %v383_v47 = vpop.f32.mrf.mxu3 }
 0x152   : > { %v384_v48 = vadd.f32 %v383_v47, %v349_v23 }
 0x154   : > { %v390_v50 = vsel %vm386_vm4, %v384_v48, -inf }
 0x1ba   : > { %v499_v38 = vpop.f32.mrf.mxu1 }
 0x1bb   : > { %v500_v39 = vadd.f32 %v499_v38, %v348_v31  ;;  %v612_v31 = vld [vmem:[#allocation8 + $0x48] sm:$0xff] }
 0x1bc   : > { %629 = vmatpush.msrb.mxu3 %v612_v31 }
 0x1bd   : > { %v505_v40 = vsel %vm386_vm4, %v500_v39, -inf }
 0x1be   : > { %506 = vmax.xlane.f32.xlu2 %v505_v40  ;;  %630 = vmatpush.msrb.mxu3 %v611_v37 }
 0x1c0   : > { %v389_v41 = vpop.xlane.xlu1 %388 }
 0x1c1   : > { %v393_v42 = vsub.f32 %v381_v33, %v389_v41 }
 0x1c2   : > { %v502_v43 = vpop.f32.mrf.mxu1 }
 0x1c3   : > { %v395_v44 = vmul.f32 1.442695, %v393_v42  ;;  %v503_v45 = vadd.f32 %v502_v43, %v349_v23  ;;  %v610_v42 = vld [vmem:[#allocation8 + $0x38] sm:$0xff] }
 0x1c4   : > { %631 = vmatpush.msrb.mxu3 %v610_v42 }
 0x1c5   : > { %875 = vpow2.f32 %v395_v44  ;;  %v508_v46 = vsel %vm386_vm4, %v503_v45, -inf }
 0x1c6   : > { %509 = vmax.xlane.f32.xlu2 %v508_v46  ;;  %v609_v46 = vld [vmem:[#allocation8 + $0x30] sm:$0xff] }
 0x1c7   : > { %632 = vmatpush.msrb.mxu3 %v609_v46 }
 0x1cb   : > { %v876_v49 = vpop.eup %875 }
 0x1cc   : > { %779 = vmatmul.msk.f32.vlgmr.msrb.gmra.mxu0 %vm386_vm4, %v876_v49  ;;  %v399_v1 = vsel %vm386_vm4, %v876_v49, 0.0 }
 0x1ce   : > { %391 = vmax.xlane.f32.xlu2 %v390_v50 }
 0x231   : > { %v507_v51 = vpop.xlane.xlu2 %506 }
 0x232   : > { %v511_v52 = vsub.f32 %v500_v39, %v507_v51 }
 0x234   : > { %v513_v53 = vmul.f32 1.442695, %v511_v52 }
 0x236   : > { %877 = vpow2.f32 %v513_v53  ;;  %v607_v53 = vld [vmem:[#allocation8 + $0x20] sm:$0xff] }
 0x239   : > { %v510_v54 = vpop.xlane.xlu2 %509 }
 0x23a   : > { %v512_v55 = vsub.f32 %v503_v45, %v510_v54 }
 0x23c   : > { %v878_v56 = vpop.eup %877  ;;  %v515_v57 = vmul.f32 1.442695, %v512_v55 }
 0x23d   : > { %785 = vmatmul.msk.f32.vlgmr.msrb.gmra.mxu2 %vm386_vm4, %v878_v56  ;;  %v517_v58 = vsel %vm386_vm4, %v878_v56, 0.0 }
 0x23e   : > { %879 = vpow2.f32 %v515_v57  ;;  %518 = vadd.xlane.f32.xlu0 %v517_v58 }
 0x241   : > { %v392_v59 = vpop.xlane.xlu2 %391 }
 0x242   : > { %v394_v60 = vsub.f32 %v384_v48, %v392_v59  ;;  %v608_v48 = vld [vmem:[#allocation8 + $0x28] sm:$0xff] }
 0x243   : > { %633 = vmatpush.msrb.mxu3 %v608_v48 }
 0x244   : > { %v880_v61 = vpop.eup %879  ;;  %v397_v62 = vmul.f32 1.442695, %v394_v60 }
 0x245   : > { %786 = vmatmul.msk.f32.gmra.mxu2 %vm386_vm4, %v880_v61  ;;  %v520_v63 = vsel %vm386_vm4, %v880_v61, 0.0  ;;  %634 = vmatpush.msrb.mxu3 %v607_v53 }
 0x246   : > { %881 = vpow2.f32 %v397_v62  ;;  %521 = vadd.xlane.f32.xlu2 %v520_v63 }
 0x249   : > { %v428_v54 = vpop.f32.mrf.mxu0 }
 0x24c   : > { %v882_v0 = vpop.eup %881 }
 0x24d   : > { %780 = vmatmul.msk.f32.gmra.mxu0 %vm386_vm4, %v882_v0  ;;  %v402_v2 = vsel %vm386_vm4, %v882_v0, 0.0 }
 0x24e   : > { %400 = vadd.xlane.f32.xlu2 %v399_v1 }
 0x256   : > { %403 = vadd.xlane.f32.xlu2 %v402_v2 }
 0x2b1   : > { %v519_v3 = vpop.xlane.xlu0 %518 }
 0x2b2   : > { %883 = vrcp.f32 %v519_v3  ;;  %v571_v8 = vand.u32 2147483648, %v519_v3  ;;  %v569_v10 = vand.u32 2147483647, %v519_v3  ;;  %vm565_vm6 = vweird.f32 %v519_v3 }
 0x2b4   : > { %v572_v17 = vor.u32 1.1754944e-38, %v571_v8  ;;  %vm570_vm8 = vcmp.eq.f32.partialorder %v569_v10, 8.507059e+37 }
 0x2b8   : > { %v884_v4 = vpop.eup %883 }
 0x2b9   : > { %v561_v5 = vmul.f32 %v884_v4, %v519_v3  ;;  %v522_v6 = vpop.xlane.xlu2 %521  ;;  %vm566_vm5 = vweird.f32 %v884_v4  ;;  %v606_v3 = vld [vmem:[#allocation8 + $0x18] sm:$0xff] }
 0x2ba   : > { %885 = vrcp.f32 %v522_v6  ;;  %vm567_vm7 = vmor %vm565_vm6, %vm566_vm5  ;;  %v586_v26 = vand.u32 2147483648, %v522_v6  ;;  %v584_v28 = vand.u32 2147483647, %v522_v6  ;;  %vm580_vm10 = vweird.f32 %v522_v6  ;;  %635 = vmatpush.msrb.mxu3 %v606_v3 }
 0x2bb   : > { %v562_v7 = vsub.f32 1.0, %v561_v5  ;;  %v604_v5 = vld [vmem:[#allocation8 + $0x8] sm:$0xff]  ;;  %vm598_vm6 = vcmask 1048064  }
 0x2bc   : > { %v587_v33 = vor.u32 1.1754944e-38, %v586_v26  ;;  %vm585_vm12 = vcmp.eq.f32.partialorder %v584_v28, 8.507059e+37 }
 0x2bd   : > { %v563_v9 = vmul.f32 %v884_v4, %v562_v7 }
 0x2bf   : > { %v564_v13 = vadd.f32 %v884_v4, %v563_v9 }
 0x2c0   : > { %v886_v15 = vpop.eup %885  ;;  %v554_v16 = vpop.f32.mrf.mxu2 }
 0x2c1   : > { %v576_v18 = vmul.f32 %v886_v15, %v522_v6  ;;  %v568_v19 = vsel %vm567_vm7, %v884_v4, %v564_v13  ;;  %v401_v20 = vpop.xlane.xlu2 %400  ;;  %vm581_vm9 = vweird.f32 %v886_v15  ;;  %v605_v4 = vld [vmem:[#allocation8 + $0x10] sm:$0xff]  ;;  %v603_v6 = vld [vmem:[#allocation8] sm:$0xff] }
 0x2c2   : > { %v573_v22 = vsel %vm570_vm8, %v572_v17, %v568_v19  ;;  %887 = vrcp.f32 %v401_v20  ;;  %vm582_vm11 = vmor %vm580_vm10, %vm581_vm9  ;;  %v445_v43 = vand.u32 2147483648, %v401_v20  ;;  %v443_v45 = vand.u32 2147483647, %v401_v20  ;;  %636 = vmatpush.msrb.mxu3 %v605_v4 }
 0x2c3   : > { %v577_v23 = vsub.f32 1.0, %v576_v18  ;;  %v574_v24 = vmul.f32 %v573_v22, %v554_v16  ;;  %vm439_vm14 = vweird.f32 %v401_v20 }
 0x2c4   : > { %v446_v50 = vor.u32 1.1754944e-38, %v445_v43  ;;  %vm444_vm0 = vcmp.eq.f32.partialorder %v443_v45, 8.507059e+37  ;;  %637 = vmatpush.msrb.mxu3 %v604_v5 }
 0x2c5   : > { %592 = vrot.lane.b32.xlu2 %v574_v24, %s1059_s21  ;;  %v578_v27 = vmul.f32 %v886_v15, %v577_v23 }
 0x2c6   : > { %638 = vmatpush.msrb.mxu3 %v603_v6 }
 0x2c7   : > { %v579_v30 = vadd.f32 %v886_v15, %v578_v27 }
 0x2c8   : > { %v888_v32 = vpop.eup %887  ;;  %v557_v38 = vpop.f32.mrf.mxu2 }
 0x2c9   : > { %v435_v34 = vmul.f32 %v888_v32, %v401_v20  ;;  %v583_v35 = vsel %vm582_vm11, %v886_v15, %v579_v30  ;;  %v404_v36 = vpop.xlane.xlu2 %403  ;;  %vm440_vm13 = vweird.f32 %v888_v32 }
 0x2ca   : > { %v588_v39 = vsel %vm585_vm12, %v587_v33, %v583_v35  ;;  %889 = vrcp.f32 %v404_v36  ;;  %vm441_vm15 = vmor %vm439_vm14, %vm440_vm13  ;;  %v460_v58 = vand.u32 2147483648, %v404_v36  ;;  %v458_v60 = vand.u32 2147483647, %v404_v36  ;;  %v431_v0 = vpop.f32.mrf.mxu0 }
 0x2cb   : > { %v436_v40 = vsub.f32 1.0, %v435_v34  ;;  %v589_v41 = vmul.f32 %v588_v39, %v557_v38  ;;  %vm454_vm3 = vweird.f32 %v404_v36 }
 0x2cc   : > { %v461_v62 = vor.u32 1.1754944e-38, %v460_v58  ;;  %vm459_vm5 = vcmp.eq.f32.partialorder %v458_v60, 8.507059e+37 }
 0x2cd   : > { %v437_v44 = vmul.f32 %v888_v32, %v436_v40  ;;  %594 = vrot.lane.b32.xlu1 %v589_v41, %s1059_s21 }
 0x2cf   : > { %v438_v47 = vadd.f32 %v888_v32, %v437_v44 }
 0x2d0   : > { %v890_v49 = vpop.eup %889 }
 0x2d1   : > { %v442_v51 = vsel %vm441_vm15, %v888_v32, %v438_v47  ;;  %v450_v52 = vmul.f32 %v890_v49, %v404_v36  ;;  %vm455_vm2 = vweird.f32 %v890_v49 }
 0x2d2   : > { %v447_v55 = vsel %vm444_vm0, %v446_v50, %v442_v51  ;;  %vm456_vm4 = vmor %vm454_vm3, %vm455_vm2 }
 0x2d3   : > { %v451_v56 = vsub.f32 1.0, %v450_v52  ;;  %v448_v57 = vmul.f32 %v447_v55, %v428_v54 }
 0x2d5   : > { %v452_v59 = vmul.f32 %v890_v49, %v451_v56  ;;  %464 = vst.msk [vmem:[#allocation2] sm:$0xff] %vm350_vm1, %v448_v57 }
 0x2d7   : > { %v453_v61 = vadd.f32 %v890_v49, %v452_v59 }
 0x2d9   : > { %v457_v63 = vsel %vm456_vm4, %v890_v49, %v453_v61 }
 0x2da   : > { %v462_v1 = vsel %vm459_vm5, %v461_v62, %v457_v63 }
 0x2db   : > { %v463_v2 = vmul.f32 %v462_v1, %v431_v0 }
 0x2dd   : > { %465 = vst.msk [vmem:[#allocation2 + $0x8] sm:$0xff] %vm350_vm1, %v463_v2 }
 0x31f   : > { %v593_v7 = vpop.permute.xlu2 %592 }
 0x320   : > { %599 = vst.msk [vmem:[#allocation2] sm:$0xff] %vm598_vm6, %v593_v7 }
 0x327   : > { %v601_v8 = vld [vmem:[#allocation2] sm:$0xff] }
 0x328   : > { %639 = vmatmul.f32.vlgmr.msrb.gmra.mxu3 %v601_v8 }
 0x33f   : > { %v595_v9 = vpop.permute.xlu1 %594 }
 0x340   : > { %600 = vst.msk [vmem:[#allocation2 + $0x8] sm:$0xff] %vm598_vm6, %v595_v9 }
 0x347   : > { %v602_v10 = vld [vmem:[#allocation2 + $0x8] sm:$0xff] }
 0x348   : > { %642 = vmatmul.f32.gmra.mxu3 %v602_v10 }
 0x3ab   : > { %v640_v12 = vpop.f32.mrf.mxu3 }
 0x3ac   : > { %v641_v13 = vadd.f32 %v874_v11, %v640_v12 }
 0x3ae   : > { %646 = vst [vmem:[%s250_s11] sm:$0xff] %v641_v13 }
 0x3cb   : > { %v643_v14 = vpop.f32.mrf.mxu3 }
 0x3cc   : > { %v644_v15 = vadd.f32 %v874_v11, %v643_v14 }
 0x3ce   : > { %647 = vst [vmem:[%s250_s11 + $0x8] sm:$0xff] %v644_v15 }
 0x3cf   : > { %1008 = shalt.err (!%p1005_p10)
}
 0x3d0   : > { %s1061_s24 = smov 128   ;;  %s1062_s26 = smov 8  }
 0x3d1   : > { %804 = dma.vmem_to_hbm [thread:$0]  (%p1160_p5), %s662_s27, 256, %s664_s25, %s649_s28, %s1061_s24, %s1061_s24, %s1062_s26  }
 0x3d2 PF: > { %s678_s10 = sand.u32 1, %s1039_s15   ;;  %p1287_p12 = scmp.ge.s32.totalorder %s1051_s18, 2 }
 0x3d3   : > { %s679_s11 = scalar_lea.sflag [#allocation5], %s678_s10 }
 0x3d4   : > { %p818_p13 = pnand %p1287_p12, %p1123_p6 }
 0x3d6   : > { %p819_p0 = pneg %p818_p13 }
 0x3d8   : > { %1034 = dma.done.wait (%p819_p0), %s679_s11, 256  }
 0x3d9   : > { %1036 = vsyncadd (%p819_p0), %s679_s11, 4294967040  ;;  %p18_p3 = scmp.ge.s32.totalorder %s1147_s12, 4   ;;  %s1288_s15 = smov %s1043_s16 }
 0x3da   : > { %s1289_s16 = smov %s1047_s17  ;;  %s1290_s17 = smov %s1156_s20 }
 0x3db   : > { %s1291_s18 = smov %s1147_s12  ;;  %20 = sbr.rel (!%p18_p3) target bundleno = 6 (0x6), region = 89 }
 0x3e0   :  { %685 = vsyncpa [#allocation4], 1 }
 0x3e1   :  { %687 = vsyncpa [#allocation4 + $0x1], 1 }
 0x3e2   :  { %688 = vsyncpa [#allocation7], 1 }
 0x3e3   :  { %689 = vsyncpa [#allocation5], 1 }
 0x3e4   :  { %691 = vsyncpa [#allocation5 + $0x1], 1 }

</bundles_post_ra>
